<compile_context>
chip_gen: v5e
topology: v5e:2x2
jax: 0.10.0
libtpu: 0.0.40
codegen_flags: <defaults>
</compile_context>

<pallas_src>
import functools

import jax
import jax.numpy as jnp
from jax.experimental import pallas as pl
from jax.experimental.pallas import tpu as pltpu


# ----------------------------- Pallas kernel --------------------------------
def _nhwc_to_nchw_kernel(x_ref, o_ref, *, chunk):
    # x_ref: (bn, hw, C) flattened NHWC tile
    # o_ref: (bn*C, hw)  flattened, lane/sublane-dense NCHW tile
    bn, hw, c = x_ref.shape

    if chunk >= bn:
        # One full-block transpose (XLU) + one full-tile unmasked store.
        t = jnp.transpose(x_ref[...], (0, 2, 1))            # (bn, C, hw)
        o_ref[...] = t.reshape(bn * c, hw)                   # leading-dim merge: free
        return

    # Chunked path: keeps the live transposed intermediate small (<= ~16 vregs)
    # while the grid step still moves a large block through the DMA pipeline.
    n_chunks = bn // chunk
    rows = chunk * c                                         # multiple of the sublane tile

    def body(s, carry):
        b0 = pl.multiple_of(s * chunk, chunk)
        r0 = pl.multiple_of(s * rows, rows)
        t = jnp.transpose(x_ref[pl.ds(b0, chunk), :, :], (0, 2, 1))   # (chunk, C, hw)
        o_ref[pl.ds(r0, rows), :] = t.reshape(rows, hw)
        return carry

    jax.lax.fori_loop(0, n_chunks, body, 0, unroll=n_chunks <= 8)


# ----------------------------- block sizing ----------------------------------
def _choose_images_per_step(N, hw, C, itemsize):
    per_image_real = hw * C * itemsize
    total_real = N * per_image_real
    # Tiny tensors (demo-scale): fixed pallas_call overhead dominates -> 1 step.
    if total_real <= (256 << 10):
        return N
    # Padded VMEM footprint per image: input tile lane-pads C -> >=128 lanes,
    # output tile is dense; x2 each for double buffering.
    padded_per_image = 2 * hw * max(C, 128) * itemsize + 2 * C * hw * itemsize
    vmem_budget = 12 << 20                      # safe vs. v5e 16 MiB / v7x 32 MiB scoped
    cap_vmem = max(1, vmem_budget // padded_per_image)
    cap_payload = max(1, (1 << 20) // per_image_real)   # ~1 MiB real payload per step
    bn = max(1, min(N // 2, cap_vmem, cap_payload))     # >=2 steps: v7x megacore
    while N % bn:                                        # largest divisor of N <= bn
        bn -= 1
    return bn


def _choose_chunk(bn, hw, C, itemsize):
    sublane = max(8, 32 // itemsize)            # rows per sublane tile for this dtype
    max_chunk = max(1, (64 << 10) // (C * hw * itemsize))   # intermediate <= ~16 vregs
    chunk = min(bn, max_chunk)
    while chunk > 1 and (bn % chunk or (chunk * C) % sublane):
        chunk -= 1
    if bn % chunk or (chunk * C) % sublane:
        return bn                                # fall back to one full-block store
    return chunk


# ----------------------------- wrapper ---------------------------------------
def nhwc_to_nchw_pallas(x):
    """x: (N, H, W, C) NHWC  ->  (N, C, H, W) NCHW."""
    N, H, W, C = x.shape
    hw = H * W
    itemsize = jnp.dtype(x.dtype).itemsize

    bn = _choose_images_per_step(N, hw, C, itemsize)
    chunk = _choose_chunk(bn, hw, C, itemsize)

    # Free metadata reshape (merges the two non-minor spatial dims).
    x2 = x.reshape(N, hw, C)

    out2 = pl.pallas_call(
        functools.partial(_nhwc_to_nchw_kernel, chunk=chunk),
        out_shape=jax.ShapeDtypeStruct((N * C, hw), x.dtype),
        grid_spec=pltpu.PrefetchScalarGridSpec(
            num_scalar_prefetch=0,
            grid=(N // bn,),
            in_specs=[pl.BlockSpec((bn, hw, C), lambda i: (i, 0, 0))],
            out_specs=pl.BlockSpec((bn * C, hw), lambda i: (i, 0))),
        compiler_params=pltpu.CompilerParams(
            # Independent batch iterations: lets v7x's two TensorCores split the
            # grid; measured-neutral on single-TC v5e/v6e.
            dimension_semantics=("parallel",),
            vmem_limit_bytes=32 << 20),
        cost_estimate=pl.CostEstimate(
            flops=0, transcendentals=0,
            bytes_accessed=2 * N * hw * C * itemsize),
    )(x2)

    # Free reshape back to NCHW.
    return out2.reshape(N, C, H, W)


# ----------------------------- main -------------------------------------------
if __name__ == "__main__":
    key = jax.random.PRNGKey(0)
    # NHWC input, as the module's forward implies: batch=2, spatial=16, channels=4.
    x = jax.random.normal(key, (2, 16, 16, 4), dtype=jnp.float32)

    out = jax.block_until_ready(nhwc_to_nchw_pallas(x))

    ref = jnp.transpose(x, (0, 3, 1, 2))
    assert out.shape == ref.shape and out.dtype == ref.dtype
    if not bool(jnp.array_equal(out, ref)):
        raise SystemExit("mismatch: max abs diff = %e"
                         % float(jnp.max(jnp.abs(out - ref))))
    print("KERNEL_OK")
</pallas_src>

<mosaic_0001>
module attributes {stable_mosaic.version = 11 : i64} {
  func.func @_nhwc_to_nchw_kernel(%arg0: i32, %arg1: memref<2x256x4xf32, #tpu.memory_space<vmem>>, %arg2: memref<8x256xf32, #tpu.memory_space<vmem>>) attributes {dimension_semantics = [#tpu.dimension_semantics<parallel>], iteration_bounds = array<i64: 1>, scalar_prefetch = 0 : i64, scratch_operands = 0 : i64, tpu.core_type = #tpu.core_type<tc>, window_params = [{transform_indices = @transform_0, window_bounds = array<i64: 2, 256, 4>}, {transform_indices = @transform_1, window_bounds = array<i64: 8, 256>}]} {
    %c0 = arith.constant 0 : index
    %c0_0 = arith.constant 0 : index
    %c0_1 = arith.constant 0 : index
    %0 = vector.load %arg1[%c0, %c0_0, %c0_1] : memref<2x256x4xf32, #tpu.memory_space<vmem>>, vector<2x256x4xf32>
    %1 = tpu.transpose %0, [0, 2, 1] : vector<2x256x4xf32> -> vector<2x4x256xf32>
    %2 = vector.shape_cast %1 : vector<2x4x256xf32> to vector<8x256xf32>
    %c0_2 = arith.constant 0 : index
    %c0_3 = arith.constant 0 : index
    %3 = vector.load %arg2[%c0_2, %c0_3] : memref<8x256xf32, #tpu.memory_space<vmem>>, vector<8x256xf32>
    tpu.vector_store %arg2[%c0_2, %c0_3], %2 {strides = array<i32>} : memref<8x256xf32, #tpu.memory_space<vmem>>, vector<8x256xf32>,
    return
  }
  func.func @transform_0(%arg0: i32) -> (i32, i32, i32) {
    %c0_i32 = arith.constant 0 : i32
    %c0_i32_0 = arith.constant 0 : i32
    %c0_i32_1 = arith.constant 0 : i32
    return %arg0, %c0_i32, %c0_i32_0 : i32, i32, i32
  }
  func.func @transform_1(%arg0: i32) -> (i32, i32) {
    %c0_i32 = arith.constant 0 : i32
    %c0_i32_0 = arith.constant 0 : i32
    return %arg0, %c0_i32 : i32, i32
  }
}

</mosaic_0001>

<bundles_post_ra>
// kernel: tpu_custom_call.1
= control target key start
LH: loop header
LB: loop body
LE: loop exit
PB: predicated region body
PF: predicated region fallthrough
CT: control target
= control target key end

     0   :  { %s468_s0 = inlined_call_operand.vmem [shape: f32[2,256,4], index: 0, kind: input, shape index: {}]   ;;  %s469_s1 = inlined_call_operand.hbm [shape: f32[8,256], index: 1, kind: output, shape index: {}]  }
   0x1   :  { %v9_v0 = vld [vmem:[%s468_s0] sm:$0xff] }
   0x2   :  { %73 = vxpose.xlu0.b32.start [1/16] (narrow) %v9_v0, 8 }
   0x3   :  { %6 = vsyncpa [#allocation3], 0  ;;  %v10_v1 = vld [vmem:[%s468_s0 + $0x8] sm:$0xff]  ;;  %v11_v2 = vld [vmem:[%s468_s0 + $0x10] sm:$0xff]  ;;  %vm207_vm0 = vcmask 1043456   ;;  %s262_s18 = smov [#allocation2]  }
   0x4   :  { %v12_v3 = vld [vmem:[%s468_s0 + $0x18] sm:$0xff]  ;;  %v13_v4 = vld [vmem:[%s468_s0 + $0x20] sm:$0xff]  ;;  %v14_v5 = vld [vmem:[%s468_s0 + $0x28] sm:$0xff]  ;;  %s224_s19 = sshll.u32 %s262_s18, 4  ;;  %s226_s22 = sshll.u32 %s469_s1, 4  ;;  %s225_s19 = int_to_ptr.vmem [resolvable:$true] %s224_s19  ;;  %s227_s22 = int_to_ptr.hbm [resolvable:$true] %s226_s22 }
   0x5   :  { %v15_v6 = vld [vmem:[%s468_s0 + $0x30] sm:$0xff]  ;;  %v16_v7 = vld [vmem:[%s468_s0 + $0x38] sm:$0xff]  ;;  %v17_v8 = vld [vmem:[%s468_s0 + $0x40] sm:$0xff] }
   0x6   :  { %v18_v9 = vld [vmem:[%s468_s0 + $0x48] sm:$0xff]  ;;  %v19_v10 = vld [vmem:[%s468_s0 + $0x50] sm:$0xff]  ;;  %v25_v11 = vld [vmem:[%s468_s0 + $0x80] sm:$0xff] }
   0x7   :  { %105 = vxpose.xlu1.b32.start [1/16] (narrow) %v25_v11, 8  ;;  %v20_v12 = vld [vmem:[%s468_s0 + $0x58] sm:$0xff]  ;;  %v26_v13 = vld [vmem:[%s468_s0 + $0x88] sm:$0xff]  ;;  %v21_v14 = vld [vmem:[%s468_s0 + $0x60] sm:$0xff] }
   0x8   :  { %v27_v15 = vld [vmem:[%s468_s0 + $0x90] sm:$0xff]  ;;  %v22_v16 = vld [vmem:[%s468_s0 + $0x68] sm:$0xff]  ;;  %v41_v17 = vld [vmem:[%s468_s0 + $0x100] sm:$0xff] }
   0x9   :  { %v28_v18 = vld [vmem:[%s468_s0 + $0x98] sm:$0xff]  ;;  %137 = vxpose.xlu2.b32.start [1/16] (narrow) %v41_v17, 8  ;;  %v23_v19 = vld [vmem:[%s468_s0 + $0x70] sm:$0xff]  ;;  %v42_v20 = vld [vmem:[%s468_s0 + $0x108] sm:$0xff] }
   0xa   :  { %74 = vxpose.xlu0.b32.cont [2/16] (narrow) %v10_v1, 8  ;;  %v29_v21 = vld [vmem:[%s468_s0 + $0xa0] sm:$0xff]  ;;  %v24_v22 = vld [vmem:[%s468_s0 + $0x78] sm:$0xff]  ;;  %v43_v23 = vld [vmem:[%s468_s0 + $0x110] sm:$0xff] }
   0xb   :  { %v30_v24 = vld [vmem:[%s468_s0 + $0xa8] sm:$0xff]  ;;  %v57_v25 = vld [vmem:[%s468_s0 + $0x180] sm:$0xff]  ;;  %v44_v26 = vld [vmem:[%s468_s0 + $0x118] sm:$0xff] }
   0xc   :  { %v31_v27 = vld [vmem:[%s468_s0 + $0xb0] sm:$0xff]  ;;  %v58_v28 = vld [vmem:[%s468_s0 + $0x188] sm:$0xff]  ;;  %v45_v29 = vld [vmem:[%s468_s0 + $0x120] sm:$0xff] }
   0xd   :  { %v32_v30 = vld [vmem:[%s468_s0 + $0xb8] sm:$0xff]  ;;  %v59_v31 = vld [vmem:[%s468_s0 + $0x190] sm:$0xff]  ;;  %v46_v32 = vld [vmem:[%s468_s0 + $0x128] sm:$0xff] }
   0xe   :  { %v33_v33 = vld [vmem:[%s468_s0 + $0xc0] sm:$0xff]  ;;  %v60_v34 = vld [vmem:[%s468_s0 + $0x198] sm:$0xff]  ;;  %v47_v35 = vld [vmem:[%s468_s0 + $0x130] sm:$0xff] }
   0xf   :  { %106 = vxpose.xlu1.b32.cont [2/16] (narrow) %v26_v13, 8  ;;  %v34_v36 = vld [vmem:[%s468_s0 + $0xc8] sm:$0xff]  ;;  %v61_v37 = vld [vmem:[%s468_s0 + $0x1a0] sm:$0xff]  ;;  %v48_v38 = vld [vmem:[%s468_s0 + $0x138] sm:$0xff] }
  0x10   :  { %v35_v39 = vld [vmem:[%s468_s0 + $0xd0] sm:$0xff]  ;;  %v62_v40 = vld [vmem:[%s468_s0 + $0x1a8] sm:$0xff]  ;;  %v49_v41 = vld [vmem:[%s468_s0 + $0x140] sm:$0xff] }
  0x11   :  { %138 = vxpose.xlu2.b32.cont [2/16] (narrow) %v42_v20, 8  ;;  %v36_v42 = vld [vmem:[%s468_s0 + $0xd8] sm:$0xff]  ;;  %v63_v43 = vld [vmem:[%s468_s0 + $0x1b0] sm:$0xff]  ;;  %v50_v44 = vld [vmem:[%s468_s0 + $0x148] sm:$0xff] }
  0x12   :  { %75 = vxpose.xlu0.b32.cont [3/16] (narrow) %v11_v2, 8  ;;  %v37_v45 = vld [vmem:[%s468_s0 + $0xe0] sm:$0xff]  ;;  %v64_v46 = vld [vmem:[%s468_s0 + $0x1b8] sm:$0xff]  ;;  %v51_v47 = vld [vmem:[%s468_s0 + $0x150] sm:$0xff] }
  0x13   :  { %v38_v48 = vld [vmem:[%s468_s0 + $0xe8] sm:$0xff]  ;;  %v65_v49 = vld [vmem:[%s468_s0 + $0x1c0] sm:$0xff]  ;;  %v52_v50 = vld [vmem:[%s468_s0 + $0x158] sm:$0xff] }
  0x14   :  { %v39_v51 = vld [vmem:[%s468_s0 + $0xf0] sm:$0xff]  ;;  %v66_v52 = vld [vmem:[%s468_s0 + $0x1c8] sm:$0xff]  ;;  %v53_v53 = vld [vmem:[%s468_s0 + $0x160] sm:$0xff] }
  0x15   :  { %v40_v54 = vld [vmem:[%s468_s0 + $0xf8] sm:$0xff]  ;;  %v67_v55 = vld [vmem:[%s468_s0 + $0x1d0] sm:$0xff]  ;;  %v54_v56 = vld [vmem:[%s468_s0 + $0x168] sm:$0xff] }
  0x16   :  { %v68_v57 = vld [vmem:[%s468_s0 + $0x1d8] sm:$0xff]  ;;  %v55_v58 = vld [vmem:[%s468_s0 + $0x170] sm:$0xff]  ;;  %v69_v59 = vld [vmem:[%s468_s0 + $0x1e0] sm:$0xff] }
  0x17   :  { %107 = vxpose.xlu1.b32.cont [3/16] (narrow) %v27_v15, 8  ;;  %v56_v60 = vld [vmem:[%s468_s0 + $0x178] sm:$0xff]  ;;  %v70_v61 = vld [vmem:[%s468_s0 + $0x1e8] sm:$0xff]  ;;  %v71_v62 = vld [vmem:[%s468_s0 + $0x1f0] sm:$0xff] }
  0x18   :  { %v72_v63 = vld [vmem:[%s468_s0 + $0x1f8] sm:$0xff] }
  0x19   :  { %139 = vxpose.xlu2.b32.cont [3/16] (narrow) %v43_v23, 8 }
  0x1a   :  { %76 = vxpose.xlu0.b32.cont [4/16] (narrow) %v12_v3, 8 }
  0x1f   :  { %108 = vxpose.xlu1.b32.cont [4/16] (narrow) %v28_v18, 8 }
  0x21   :  { %140 = vxpose.xlu2.b32.cont [4/16] (narrow) %v44_v26, 8 }
  0x22   :  { %77 = vxpose.xlu0.b32.cont [5/16] (narrow) %v13_v4, 8 }
  0x27   :  { %109 = vxpose.xlu1.b32.cont [5/16] (narrow) %v29_v21, 8 }
  0x29   :  { %141 = vxpose.xlu2.b32.cont [5/16] (narrow) %v45_v29, 8 }
  0x2a   :  { %78 = vxpose.xlu0.b32.cont [6/16] (narrow) %v14_v5, 8 }
  0x2f   :  { %110 = vxpose.xlu1.b32.cont [6/16] (narrow) %v30_v24, 8 }
  0x31   :  { %142 = vxpose.xlu2.b32.cont [6/16] (narrow) %v46_v32, 8 }
  0x32   :  { %79 = vxpose.xlu0.b32.cont [7/16] (narrow) %v15_v6, 8 }
  0x37   :  { %111 = vxpose.xlu1.b32.cont [7/16] (narrow) %v31_v27, 8 }
  0x39   :  { %143 = vxpose.xlu2.b32.cont [7/16] (narrow) %v47_v35, 8 }
  0x3a   :  { %80 = vxpose.xlu0.b32.cont [8/16] (narrow) %v16_v7, 8 }
  0x3f   :  { %112 = vxpose.xlu1.b32.cont [8/16] (narrow) %v32_v30, 8 }
  0x41   :  { %144 = vxpose.xlu2.b32.cont [8/16] (narrow) %v48_v38, 8 }
  0x42   :  { %81 = vxpose.xlu0.b32.cont [9/16] (narrow) %v17_v8, 8 }
  0x47   :  { %113 = vxpose.xlu1.b32.cont [9/16] (narrow) %v33_v33, 8 }
  0x49   :  { %145 = vxpose.xlu2.b32.cont [9/16] (narrow) %v49_v41, 8 }
  0x4a   :  { %82 = vxpose.xlu0.b32.cont [10/16] (narrow) %v18_v9, 8 }
  0x4f   :  { %114 = vxpose.xlu1.b32.cont [10/16] (narrow) %v34_v36, 8 }
  0x51   :  { %146 = vxpose.xlu2.b32.cont [10/16] (narrow) %v50_v44, 8 }
  0x52   :  { %83 = vxpose.xlu0.b32.cont [11/16] (narrow) %v19_v10, 8 }
  0x57   :  { %115 = vxpose.xlu1.b32.cont [11/16] (narrow) %v35_v39, 8 }
  0x59   :  { %147 = vxpose.xlu2.b32.cont [11/16] (narrow) %v51_v47, 8 }
  0x5a   :  { %84 = vxpose.xlu0.b32.cont [12/16] (narrow) %v20_v12, 8 }
  0x5f   :  { %116 = vxpose.xlu1.b32.cont [12/16] (narrow) %v36_v42, 8 }
  0x61   :  { %148 = vxpose.xlu2.b32.cont [12/16] (narrow) %v52_v50, 8 }
  0x62   :  { %85 = vxpose.xlu0.b32.cont [13/16] (narrow) %v21_v14, 8 }
  0x67   :  { %117 = vxpose.xlu1.b32.cont [13/16] (narrow) %v37_v45, 8 }
  0x69   :  { %149 = vxpose.xlu2.b32.cont [13/16] (narrow) %v53_v53, 8 }
  0x6a   :  { %86 = vxpose.xlu0.b32.cont [14/16] (narrow) %v22_v16, 8 }
  0x6f   :  { %118 = vxpose.xlu1.b32.cont [14/16] (narrow) %v38_v48, 8 }
  0x71   :  { %150 = vxpose.xlu2.b32.cont [14/16] (narrow) %v54_v56, 8 }
  0x72   :  { %87 = vxpose.xlu0.b32.cont [15/16] (narrow) %v23_v19, 8 }
  0x77   :  { %119 = vxpose.xlu1.b32.cont [15/16] (narrow) %v39_v51, 8 }
  0x79   :  { %151 = vxpose.xlu2.b32.cont [15/16] (narrow) %v55_v58, 8 }
  0x7a   :  { %88 = vxpose.xlu0.b32.end [16/16] (narrow) %v24_v22, 8 }
  0x7f   :  { %120 = vxpose.xlu1.b32.end [16/16] (narrow) %v40_v54, 8 }
  0x81   :  { %152 = vxpose.xlu2.b32.end [16/16] (narrow) %v56_v60, 8 }
  0x82   :  { %169 = vxpose.xlu0.b32.start [1/16] (narrow) %v57_v25, 8 }
  0x8a   :  { %170 = vxpose.xlu0.b32.cont [2/16] (narrow) %v58_v28, 8 }
  0x92   :  { %171 = vxpose.xlu0.b32.cont [3/16] (narrow) %v59_v31, 8 }
  0x9a   :  { %172 = vxpose.xlu0.b32.cont [4/16] (narrow) %v60_v34, 8 }
  0xa2   :  { %173 = vxpose.xlu0.b32.cont [5/16] (narrow) %v61_v37, 8  ;;  %v153_v5 = vpop.trf.xlu2 }
  0xa6   :  { %v89_v1 = vpop.trf.xlu0 }
  0xaa   :  { %174 = vxpose.xlu0.b32.cont [6/16] (narrow) %v62_v40, 8 }
  0xab   :  { %v121_v0 = vpop.trf.xlu1 }
  0xac   :  { %v205_v2 = vrot.slane %v121_v0, 4 }
  0xae   :  { %v208_v3 = vsel %vm207_vm0, %v89_v1, %v205_v2 }
  0xaf   :  { %210 = vst [vmem:[#allocation1] ss:$2 sm:$0xff] %v208_v3 }
  0xb2   :  { %175 = vxpose.xlu0.b32.cont [7/16] (narrow) %v63_v43, 8 }
  0xba   :  { %176 = vxpose.xlu0.b32.cont [8/16] (narrow) %v64_v46, 8 }
  0xc2   :  { %177 = vxpose.xlu0.b32.cont [9/16] (narrow) %v65_v49, 8 }
  0xca   :  { %178 = vxpose.xlu0.b32.cont [10/16] (narrow) %v66_v52, 8 }
  0xd2   :  { %179 = vxpose.xlu0.b32.cont [11/16] (narrow) %v67_v55, 8 }
  0xda   :  { %180 = vxpose.xlu0.b32.cont [12/16] (narrow) %v68_v57, 8 }
  0xe2   :  { %181 = vxpose.xlu0.b32.cont [13/16] (narrow) %v69_v59, 8 }
  0xea   :  { %182 = vxpose.xlu0.b32.cont [14/16] (narrow) %v70_v61, 8 }
  0xf2   :  { %183 = vxpose.xlu0.b32.cont [15/16] (narrow) %v71_v62, 8 }
  0xfa   :  { %184 = vxpose.xlu0.b32.end [16/16] (narrow) %v72_v63, 8 }
 0x126   :  { %v185_v4 = vpop.trf.xlu0 }
 0x127   :  { %v206_v6 = vrot.slane %v185_v4, 4 }
 0x129   :  { %v209_v7 = vsel %vm207_vm0, %v153_v5, %v206_v6 }
 0x12a   :  { %212 = vst [vmem:[#allocation1 + $0x1] ss:$2 sm:$0xff] %v209_v7 }
 0x131   :  { %v213_v8 = vld.sshfl [vmem:[#allocation1] sm:$0xff pattern:$0x75316420]  ;;  %v214_v9 = vld.sshfl [vmem:[#allocation1 + $0x8] sm:$0xff pattern:$0x75316420] }
 0x132   :  { %217 = vst [vmem:[#allocation2] sm:$0xff] %v213_v8 }
 0x133   :  { %218 = vst [vmem:[#allocation2 + $0x8] sm:$0xff] %v214_v9 }
 0x134   :  { %229 = dma.vmem_to_hbm [thread:$0]  %s225_s19, 256, %s227_s22, [#allocation3]  }
 0x135   :  { %260 = dma.done.wait [#allocation3], 256  }
 0x136   :  { %261 = vsyncadd [#allocation3], 4294967040 }
 0x137   :  { %234 = vsyncpa [#allocation3], 1 }

</bundles_post_ra>
